<compile_context>
chip_gen: v7x
topology: tpu7x:2x2x1
jax: 0.10.0
libtpu: 0.0.40
codegen_flags: <defaults>
</compile_context>

<pallas_src>
import math
import functools

import jax
import jax.numpy as jnp
from jax.experimental import pallas as pl
from jax.experimental.pallas import tpu as pltpu


def _pe_add_kernel(x_ref, pe_ref, o_ref, *, scale):
    # x_ref, pe_ref, o_ref all have identical (rows, lanes) tile shapes.
    o_ref[...] = (x_ref[...] * scale + pe_ref[...]).astype(o_ref.dtype)


def make_positional_encoding_table(embedding_size: int, max_length: int) -> jnp.ndarray:
    """Deterministic sin/cos table, identical to the PyTorch __init__ buffer."""
    position = jnp.arange(max_length, dtype=jnp.float32)[:, None]            # (L, 1)
    div_term = jnp.exp(
        jnp.arange(0, embedding_size, 2, dtype=jnp.float32)
        * (-math.log(10000.0) / embedding_size)
    )                                                                         # (E/2,)
    pe = jnp.zeros((max_length, embedding_size), dtype=jnp.float32)
    pe = pe.at[:, 0::2].set(jnp.sin(position * div_term))
    pe = pe.at[:, 1::2].set(jnp.cos(position * div_term))
    return pe                                                                 # (L, E)


def _row_tile(nrows: int, ncols: int, itemsize: int,
              target_bytes: int = 2 * 1024 * 1024, max_rows: int = 1024) -> int:
    """Largest legal row tile: full extent, or a multiple of 8 sized so that one
    tile stays ~target_bytes (keeps 3 arrays x 2 buffers under the default
    scoped-VMEM limits on v5e/v6e/v7x)."""
    budget_rows = max(8, target_bytes // max(1, ncols * itemsize))
    tr = min(nrows, max_rows, budget_rows)
    if tr >= nrows:
        return nrows                   # block dim == full array dim is always legal
    return max(8, (tr // 8) * 8)       # otherwise keep sublane dim a multiple of 8


def positional_encoding_forward(x: jnp.ndarray, pe_table: jnp.ndarray) -> jnp.ndarray:
    """x: (B, S, E); pe_table: (max_length, E).  Returns x*sqrt(E) + pe[:S]."""
    B, S, E = x.shape
    scale = math.sqrt(E)
    pe = pe_table[:S, :].astype(x.dtype)                 # (S, E) glue slice in plain JAX
    itemsize = jnp.dtype(x.dtype).itemsize
    kernel = functools.partial(_pe_add_kernel, scale=scale)
    flops = 2 * B * S * E

    if E % 128 == 0:
        # Lane axis already dense: keep 3D, tile the sequence axis.
        ts = _row_tile(S, E, itemsize)
        grid = (pl.cdiv(S, ts), B)     # seq tile outer -> pe re-fetched only on s change
        cost = pl.CostEstimate(
            flops=flops, transcendentals=0,
            bytes_accessed=(2 * B * S * E + S * E) * itemsize)
        return pl.pallas_call(
            kernel,
            out_shape=jax.ShapeDtypeStruct((B, S, E), x.dtype),
            grid=grid,
            in_specs=[
                pl.BlockSpec((None, ts, E), lambda s, b: (b, s, 0)),   # x: (ts, E) tile
                pl.BlockSpec((ts, E), lambda s, b: (s, 0)),            # pe: shared slab
            ],
            out_specs=pl.BlockSpec((None, ts, E), lambda s, b: (b, s, 0)),
            compiler_params=pltpu.CompilerParams(
                dimension_semantics=("parallel", "parallel")),
            cost_estimate=cost,
        )(x, pe)

    # E < 128 (e.g. the module's E=32): fold (S, E) into the lane axis so stores
    # are full-width unmasked vst instead of masked vst.msk on a narrow E.
    cols = S * E
    x2 = x.reshape(B, cols)
    tb = _row_tile(B, cols, itemsize)
    # pe only varies over (S, E); pre-broadcast exactly one row tile in the wrapper
    # so the kernel body has no broadcast, and the constant index_map keeps it
    # resident in VMEM (DMA'd once).
    pe_tile = jnp.broadcast_to(pe.reshape(1, cols), (tb, cols))
    # TODO(synk): for very large S*E with narrow E, additionally tile the lane axis.
    grid = (pl.cdiv(B, tb),)
    cost = pl.CostEstimate(
        flops=flops, transcendentals=0,
        bytes_accessed=(2 * B + tb) * cols * itemsize)
    out2 = pl.pallas_call(
        kernel,
        out_shape=jax.ShapeDtypeStruct((B, cols), x.dtype),
        grid=grid,
        in_specs=[
            pl.BlockSpec((tb, cols), lambda i: (i, 0)),       # x row tile
            pl.BlockSpec((tb, cols), lambda i: (0, 0)),       # pe: constant block, resident
        ],
        out_specs=pl.BlockSpec((tb, cols), lambda i: (i, 0)),
        compiler_params=pltpu.CompilerParams(dimension_semantics=("parallel",)),
        cost_estimate=cost,
    )(x2, pe_tile)
    return out2.reshape(B, S, E)


if __name__ == "__main__":
    key = jax.random.PRNGKey(0)
    k1, k2 = jax.random.split(key)

    # Primary case (matches the module's toy config): E=32 < 128 -> lane-folded path.
    embedding_size, max_length, B, S = 32, 16, 2, 8
    x = jax.random.normal(k1, (B, S, embedding_size), dtype=jnp.float32)
    pe_table = make_positional_encoding_table(embedding_size, max_length)
    out = jax.block_until_ready(positional_encoding_forward(x, pe_table))
    ref = x * math.sqrt(embedding_size) + pe_table[None, :S, :]
    assert out.shape == (B, S, embedding_size)
    assert jnp.allclose(out, ref, atol=1e-5, rtol=1e-5)

    # Secondary small check of the lane-dense (E % 128 == 0) path.
    embedding_size2, max_length2, B2, S2 = 128, 32, 4, 16
    x2 = jax.random.normal(k2, (B2, S2, embedding_size2), dtype=jnp.float32)
    pe_table2 = make_positional_encoding_table(embedding_size2, max_length2)
    out2 = jax.block_until_ready(positional_encoding_forward(x2, pe_table2))
    ref2 = x2 * math.sqrt(embedding_size2) + pe_table2[None, :S2, :]
    assert jnp.allclose(out2, ref2, atol=1e-5, rtol=1e-5)

    print("KERNEL_OK")
</pallas_src>

<mosaic_0001>
module attributes {stable_mosaic.version = 11 : i64} {
  func.func @_pe_add_kernel(%arg0: i32, %arg1: memref<2x256xf32, #tpu.memory_space<vmem>>, %arg2: memref<2x256xf32, #tpu.memory_space<vmem>>, %arg3: memref<2x256xf32, #tpu.memory_space<vmem>>) attributes {dimension_semantics = [#tpu.dimension_semantics<parallel>], iteration_bounds = array<i64: 1>, scalar_prefetch = 0 : i64, scratch_operands = 0 : i64, tpu.core_type = #tpu.core_type<tc>, window_params = [{transform_indices = @transform_0, window_bounds = array<i64: 2, 256>}, {pipeline_mode = #tpu.pipeline_mode<synchronous>, transform_indices = @transform_1, window_bounds = array<i64: 2, 256>}, {transform_indices = @transform_2, window_bounds = array<i64: 2, 256>}]} {
    %c0 = arith.constant 0 : index
    %c0_0 = arith.constant 0 : index
    %0 = vector.load %arg1[%c0, %c0_0] : memref<2x256xf32, #tpu.memory_space<vmem>>, vector<2x256xf32>
    %cst = arith.constant 5.65685415 : f32
    %1 = vector.broadcast %cst : f32 to vector<2x256xf32>
    %2 = arith.mulf %0, %1 : vector<2x256xf32>
    %c0_1 = arith.constant 0 : index
    %c0_2 = arith.constant 0 : index
    %3 = vector.load %arg2[%c0_1, %c0_2] : memref<2x256xf32, #tpu.memory_space<vmem>>, vector<2x256xf32>
    %4 = arith.addf %2, %3 : vector<2x256xf32>
    %c0_3 = arith.constant 0 : index
    %c0_4 = arith.constant 0 : index
    %5 = vector.load %arg3[%c0_3, %c0_4] : memref<2x256xf32, #tpu.memory_space<vmem>>, vector<2x256xf32>
    tpu.vector_store %arg3[%c0_3, %c0_4], %4 {strides = array<i32>} : memref<2x256xf32, #tpu.memory_space<vmem>>, vector<2x256xf32>,
    return
  }
  func.func @transform_0(%arg0: i32) -> (i32, i32) {
    %c0_i32 = arith.constant 0 : i32
    %c0_i32_0 = arith.constant 0 : i32
    return %arg0, %c0_i32 : i32, i32
  }
  func.func @transform_1(%arg0: i32) -> (i32, i32) {
    %c0_i32 = arith.constant 0 : i32
    %c0_i32_0 = arith.constant 0 : i32
    %c0_i32_1 = arith.constant 0 : i32
    return %c0_i32, %c0_i32_0 : i32, i32
  }
  func.func @transform_2(%arg0: i32) -> (i32, i32) {
    %c0_i32 = arith.constant 0 : i32
    %c0_i32_0 = arith.constant 0 : i32
    return %arg0, %c0_i32 : i32, i32
  }
}

</mosaic_0001>

<bundles_post_ra>
// kernel: tpu_custom_call.1
= control target key start
LH: loop header
LB: loop body
LE: loop exit
PB: predicated region body
PF: predicated region fallthrough
CT: control target
= control target key end

     0   :  { %7 = vsyncpa [#allocation3], 0  ;;  %s186_s0 = inlined_call_operand.hbm [shape: f32[2,256], index: 0, kind: input, shape index: {}]   ;;  %s187_s1 = inlined_call_operand.hbm [shape: f32[2,256], index: 1, kind: input, shape index: {}]   ;;  %s188_s2 = inlined_call_operand.hbm [shape: f32[2,256], index: 2, kind: output, shape index: {}]  }
   0x1   :  { %8 = vsyncpa [#allocation6], 0 }
   0x2   :  { %9 = vsyncpa [#allocation4], 0  ;;  %s132_s9 = smov [#allocation2]   ;;  %s133_s11 = smov [#allocation5]  }
   0x3   :  { %s16_s10 = sshll.u32 %s132_s9, 4  ;;  %s26_s12 = sshll.u32 %s133_s11, 4  ;;  %s17_s10 = int_to_ptr.vmem [resolvable:$true] %s16_s10  ;;  %s27_s12 = int_to_ptr.vmem [resolvable:$true] %s26_s12 }
   0x4   :  { %s60_s15 = scalar_lea.hbm %s186_s0, 64 }
   0x5   :  { %p61_p0 = scmp.ne.s32.totalorder %s186_s0, %s60_s15  ;;  %p64_p1 = scmp.lt.u32.totalorder %s60_s15, %s186_s0 }
   0x7   :  { %p66_p2 = pnand %p64_p1, %p61_p0 }
   0x9   :  { %69 = shalt.err (!%p66_p2)
}
   0xa   :  { %s70_s20 = scalar_lea.vmem %s17_s10, 64  ;;  %p75_p4 = scmp.lt.s32.totalorder %s17_s10, %s17_s10 }
   0xb   :  { %p71_p3 = scmp.ne.s32.totalorder %s17_s10, %s70_s20  ;;  %p76_p5 = scmp.lt.s32.totalorder %s70_s20, %s70_s20 }
   0xd   :  { %p77_p6 = por %p76_p5, %p75_p4 }
   0xf   :  { %p78_p7 = pnand %p77_p6, %p71_p3 }
  0x11   :  { %81 = shalt.err (!%p78_p7)
}
  0x12   :  { %19 = dma.hbm_to_vmem [thread:$0]  %s186_s0, 64, %s17_s10, [#allocation3]  }
  0x13   :  { %s82_s25 = scalar_lea.hbm %s187_s1, 64 }
  0x14   :  { %p83_p8 = scmp.ne.s32.totalorder %s187_s1, %s82_s25  ;;  %p86_p9 = scmp.lt.u32.totalorder %s82_s25, %s187_s1 }
  0x16   :  { %p88_p10 = pnand %p86_p9, %p83_p8 }
  0x18   :  { %91 = shalt.err (!%p88_p10)
}
  0x19   :  { %s92_s30 = scalar_lea.vmem %s27_s12, 64  ;;  %p97_p12 = scmp.lt.s32.totalorder %s27_s12, %s27_s12 }
  0x1a   :  { %p93_p11 = scmp.ne.s32.totalorder %s27_s12, %s92_s30  ;;  %p98_p13 = scmp.lt.s32.totalorder %s92_s30, %s92_s30 }
  0x1c   :  { %p99_p0 = por %p98_p13, %p97_p12 }
  0x1e   :  { %p100_p1 = pnand %p99_p0, %p93_p11 }
  0x20   :  { %103 = shalt.err (!%p100_p1)
}
  0x21   :  { %29 = dma.hbm_to_vmem [thread:$0]  %s187_s1, 64, %s27_s12, [#allocation6]  }
  0x22   :  { %126 = dma.done.wait [#allocation3], 64  }
  0x23   :  { %127 = vsyncadd [#allocation3], 4294967232 }
  0x24   :  { %128 = dma.done.wait [#allocation6], 64  }
  0x25   :  { %129 = vsyncadd [#allocation6], 4294967232  ;;  %v36_v0 = vld [vmem:[#allocation2] sm:$0xf]  ;;  %v38_v1 = vld [vmem:[#allocation5] sm:$0xf] }
  0x26   :  { %s134_s4 = smov [#allocation7]   ;;  %v37_v2 = vmul.f32 5.656854, %v36_v0 }
  0x27   :  { %s47_s5 = sshll.u32 %s134_s4, 4  ;;  %s48_s5 = int_to_ptr.vmem [resolvable:$true] %s47_s5 }
  0x28   :  { %v39_v3 = vadd.f32 %v38_v1, %v37_v2  ;;  %s104_s6 = scalar_lea.vmem %s48_s5, 64  ;;  %p109_p3 = scmp.lt.s32.totalorder %s48_s5, %s48_s5 }
  0x29   :  { %p105_p2 = scmp.ne.s32.totalorder %s48_s5, %s104_s6  ;;  %p110_p4 = scmp.lt.s32.totalorder %s104_s6, %s104_s6 }
  0x2a   :  { %40 = vst [vmem:[#allocation7] sm:$0xf] %v39_v3 }
  0x2b   :  { %p111_p5 = por %p110_p4, %p109_p3 }
  0x2d   :  { %p112_p6 = pnand %p111_p5, %p105_p2 }
  0x2f   :  { %115 = shalt.err (!%p112_p6)
}
  0x30   :  { %s116_s8 = scalar_lea.hbm %s188_s2, 64 }
  0x31   :  { %p117_p7 = scmp.ne.s32.totalorder %s188_s2, %s116_s8  ;;  %p120_p8 = scmp.lt.u32.totalorder %s116_s8, %s188_s2 }
  0x33   :  { %p122_p9 = pnand %p120_p8, %p117_p7 }
  0x35   :  { %125 = shalt.err (!%p122_p9)
}
  0x36   :  { %50 = dma.vmem_to_hbm [thread:$0]  %s48_s5, 64, %s188_s2, [#allocation4]  }
  0x37   :  { %130 = dma.done.wait [#allocation4], 64  }
  0x38   :  { %131 = vsyncadd [#allocation4], 4294967232 }
  0x39   :  { %54 = vsyncpa [#allocation3], 1 }
  0x3a   :  { %55 = vsyncpa [#allocation6], 1 }
  0x3b   :  { %56 = vsyncpa [#allocation4], 1 }

</bundles_post_ra>
